<compile_context>
chip_gen: v7x
topology: tpu7x:2x2x1
jax: 0.10.0
libtpu: 0.0.40
codegen_flags: <defaults>
</compile_context>

<pallas_src>
import math
from functools import partial

import jax
import jax.numpy as jnp
from jax.experimental import pallas as pl
from jax.experimental.pallas import tpu as pltpu

_LN_EPS = 1e-5


# ----------------------------------------------------------------------------- #
# Pallas kernels
# ----------------------------------------------------------------------------- #
def _linear_kernel(*refs, act, has_scale):
    if has_scale:
        x_ref, w_ref, b_ref, s_ref, o_ref = refs
    else:
        x_ref, w_ref, b_ref, o_ref = refs
    x = x_ref[...].astype(jnp.bfloat16)                      # bf16 MXU inputs, f32 accumulate
    w = w_ref[...].astype(jnp.bfloat16)
    y = jnp.dot(x, w, preferred_element_type=jnp.float32)
    y = y + b_ref[...]                                       # bias stays f32
    if act == "relu":
        y = jnp.maximum(y, 0.0)
    if has_scale:
        y = y * s_ref[...]                                   # (tm, 1) broadcast, e.g. padding mask
    o_ref[...] = y


def pallas_linear(x, w, b, act=None, row_scale=None, tm=512):
    """y = x @ w + b (optional fused ReLU and per-row scale). w: (din, dout), b: (dout,)."""
    orig_shape = x.shape
    din, dout = w.shape
    x2 = x.reshape(-1, din)
    rows = x2.shape[0]
    tm = min(tm, rows)
    in_specs = [
        pl.BlockSpec((tm, din), lambda i: (i, 0)),
        pl.BlockSpec((din, dout), lambda i: (0, 0)),         # weight stays resident
        pl.BlockSpec((1, dout), lambda i: (0, 0)),           # bias stays resident
    ]
    args = [x2, w, b.reshape(1, dout)]
    if row_scale is not None:
        in_specs.append(pl.BlockSpec((tm, 1), lambda i: (i, 0)))
        args.append(row_scale.reshape(rows, 1).astype(jnp.float32))
    out = pl.pallas_call(
        partial(_linear_kernel, act=act, has_scale=row_scale is not None),
        out_shape=jax.ShapeDtypeStruct((rows, dout), jnp.float32),
        grid=(pl.cdiv(rows, tm),),
        in_specs=in_specs,
        out_specs=pl.BlockSpec((tm, dout), lambda i: (i, 0)),
        compiler_params=pltpu.CompilerParams(dimension_semantics=("parallel",)),
        cost_estimate=pl.CostEstimate(
            flops=2 * rows * din * dout,
            transcendentals=0,
            bytes_accessed=4 * (rows * din + din * dout + rows * dout)),
    )(*args)
    return out.reshape(orig_shape[:-1] + (dout,))


def _layernorm(h, g, b, eps):
    mean = jnp.mean(h, axis=-1, keepdims=True)
    hc = h - mean
    var = jnp.mean(hc * hc, axis=-1, keepdims=True)
    return hc * jax.lax.rsqrt(var + eps) * g + b


def _linear_add_ln_kernel(x_ref, w_ref, b_ref, r_ref, g_ref, be_ref, o_ref, *, eps):
    x = x_ref[...].astype(jnp.bfloat16)
    w = w_ref[...].astype(jnp.bfloat16)
    y = jnp.dot(x, w, preferred_element_type=jnp.float32) + b_ref[...]
    o_ref[...] = _layernorm(r_ref[...] + y, g_ref[...], be_ref[...], eps)


def pallas_linear_add_ln(x, w, b, res, gamma, beta, tm=512, eps=_LN_EPS):
    """out = LayerNorm(res + x @ w + b). Fuses out-projection, residual add and LN."""
    orig_shape = res.shape
    din, dout = w.shape
    x2 = x.reshape(-1, din)
    r2 = res.reshape(-1, dout)
    rows = x2.shape[0]
    tm = min(tm, rows)
    out = pl.pallas_call(
        partial(_linear_add_ln_kernel, eps=eps),
        out_shape=jax.ShapeDtypeStruct((rows, dout), jnp.float32),
        grid=(pl.cdiv(rows, tm),),
        in_specs=[
            pl.BlockSpec((tm, din), lambda i: (i, 0)),
            pl.BlockSpec((din, dout), lambda i: (0, 0)),
            pl.BlockSpec((1, dout), lambda i: (0, 0)),
            pl.BlockSpec((tm, dout), lambda i: (i, 0)),
            pl.BlockSpec((1, dout), lambda i: (0, 0)),
            pl.BlockSpec((1, dout), lambda i: (0, 0)),
        ],
        out_specs=pl.BlockSpec((tm, dout), lambda i: (i, 0)),
        compiler_params=pltpu.CompilerParams(dimension_semantics=("parallel",)),
    )(x2, w, b.reshape(1, dout), r2, gamma.reshape(1, dout), beta.reshape(1, dout))
    return out.reshape(orig_shape)


def _ffn_ln_kernel(x_ref, w1_ref, b1_ref, w2_ref, b2_ref, g_ref, be_ref, o_ref, *, eps):
    x = x_ref[...]
    h = jnp.dot(x.astype(jnp.bfloat16), w1_ref[...].astype(jnp.bfloat16),
                preferred_element_type=jnp.float32) + b1_ref[...]
    h = jnp.maximum(h, 0.0)
    y = jnp.dot(h.astype(jnp.bfloat16), w2_ref[...].astype(jnp.bfloat16),
                preferred_element_type=jnp.float32) + b2_ref[...]
    o_ref[...] = _layernorm(x + y, g_ref[...], be_ref[...], eps)


def pallas_ffn_ln(x, w1, b1, w2, b2, gamma, beta, tm=512, eps=_LN_EPS):
    """out = LayerNorm(x + relu(x @ w1 + b1) @ w2 + b2). Full FFN block in one kernel."""
    orig_shape = x.shape
    c, dff = w1.shape
    x2 = x.reshape(-1, c)
    rows = x2.shape[0]
    tm = min(tm, rows)
    out = pl.pallas_call(
        partial(_ffn_ln_kernel, eps=eps),
        out_shape=jax.ShapeDtypeStruct((rows, c), jnp.float32),
        grid=(pl.cdiv(rows, tm),),
        in_specs=[
            pl.BlockSpec((tm, c), lambda i: (i, 0)),
            pl.BlockSpec((c, dff), lambda i: (0, 0)),
            pl.BlockSpec((1, dff), lambda i: (0, 0)),
            pl.BlockSpec((dff, c), lambda i: (0, 0)),
            pl.BlockSpec((1, c), lambda i: (0, 0)),
            pl.BlockSpec((1, c), lambda i: (0, 0)),
            pl.BlockSpec((1, c), lambda i: (0, 0)),
        ],
        out_specs=pl.BlockSpec((tm, c), lambda i: (i, 0)),
        compiler_params=pltpu.CompilerParams(dimension_semantics=("parallel",)),
        cost_estimate=pl.CostEstimate(
            flops=4 * rows * c * dff,
            transcendentals=0,
            bytes_accessed=4 * (2 * rows * c + 2 * c * dff)),
    )(x2, w1, b1.reshape(1, dff), w2, b2.reshape(1, c),
      gamma.reshape(1, c), beta.reshape(1, c))
    return out.reshape(orig_shape)


def _mhsa_kernel(q_ref, k_ref, v_ref, o_ref, *, n_heads, scale):
    q = q_ref[0]                                             # (L, C)
    k = k_ref[0]
    v = v_ref[0]
    c = q.shape[-1]
    dh = c // n_heads
    outs = []
    for h in range(n_heads):                                 # static unrolled head loop
        sl = slice(h * dh, (h + 1) * dh)
        qh = (q[:, sl] * scale).astype(jnp.bfloat16)
        kh = k[:, sl].astype(jnp.bfloat16)
        vh = v[:, sl].astype(jnp.bfloat16)
        s = jax.lax.dot_general(qh, kh, (((1,), (1,)), ((), ())),
                                preferred_element_type=jnp.float32)       # (L, L)
        s = s - jnp.max(s, axis=-1, keepdims=True)
        e = jnp.exp(s)
        p = e * pl.reciprocal(jnp.sum(e, axis=-1, keepdims=True), approx=True)
        outs.append(jnp.dot(p.astype(jnp.bfloat16), vh,
                            preferred_element_type=jnp.float32))          # (L, dh)
    o_ref[0] = jnp.concatenate(outs, axis=-1)                # lane-dense (L, C) store


def pallas_mhsa_core(q, k, v, n_heads, scale):
    """softmax(q k^T * scale) v for all heads of one batch element per grid step."""
    b, l, c = q.shape
    spec = pl.BlockSpec((1, l, c), lambda i: (i, 0, 0))
    return pl.pallas_call(
        partial(_mhsa_kernel, n_heads=n_heads, scale=scale),
        out_shape=jax.ShapeDtypeStruct((b, l, c), jnp.float32),
        grid=(b,),
        in_specs=[spec, spec, spec],
        out_specs=spec,
        compiler_params=pltpu.CompilerParams(dimension_semantics=("parallel",)),
    )(q, k, v)


# ----------------------------------------------------------------------------- #
# Multi-head attention (nn.MultiheadAttention, batch_first, eval mode)
#   query == key (= tgt + pos), value differs  ->  fused (C, 2C) QK projection.
#   Output projection is fused with the residual add + pre_norm.
# ----------------------------------------------------------------------------- #
def multihead_attention_block(p, qk_in, v_in, residual, gamma, beta, n_heads):
    b, l, c = qk_in.shape
    dh = c // n_heads
    qk = pallas_linear(qk_in, p["wqk"], p["bqk"])            # (B, L, 2C) fused projection
    q = qk[..., :c]
    k = qk[..., c:]
    v = pallas_linear(v_in, p["wv"], p["bv"])
    o = pallas_mhsa_core(q, k, v, n_heads, scale=1.0 / math.sqrt(dh))
    return pallas_linear_add_ln(o, p["wo"], p["bo"], residual, gamma, beta)


# ----------------------------------------------------------------------------- #
# Multi-scale deformable attention (deformable-DETR semantics)
# ----------------------------------------------------------------------------- #
def ms_deform_attn_core(value, spatial_shapes, sampling_locations, attention_weights):
    # value: (B, Nv, H, Dh); sampling_locations: (B, Nq, H, L, P, 2) normalized [0,1] (x, y)
    b, _, n_heads, dh = value.shape
    nq = sampling_locations.shape[1]
    sampled = []
    start = 0
    for lvl, (h, w) in enumerate(spatial_shapes):
        v = value[:, start:start + h * w].reshape(b, h, w, n_heads, dh)
        start += h * w
        loc = sampling_locations[:, :, :, lvl]               # (B, Nq, H, P, 2)
        # TODO(synk): F.grid_sample-equivalent bilinear data-dependent gather stays in JAX glue.
        x = loc[..., 0] * w - 0.5                            # align_corners=False
        y = loc[..., 1] * h - 0.5
        x0 = jnp.floor(x)
        y0 = jnp.floor(y)
        x1 = x0 + 1.0
        y1 = y0 + 1.0
        wx1 = x - x0
        wx0 = 1.0 - wx1
        wy1 = y - y0
        wy0 = 1.0 - wy1
        b_idx = jnp.arange(b)[:, None, None, None]
        h_idx = jnp.arange(n_heads)[None, None, :, None]

        def tap(yy, xx):
            valid = (xx >= 0) & (xx < w) & (yy >= 0) & (yy < h)   # zero padding outside
            xi = jnp.clip(xx, 0, w - 1).astype(jnp.int32)
            yi = jnp.clip(yy, 0, h - 1).astype(jnp.int32)
            g = v[b_idx, yi, xi, h_idx]                      # (B, Nq, H, P, Dh)
            return g * valid[..., None].astype(g.dtype)

        s = (tap(y0, x0) * (wy0 * wx0)[..., None]
             + tap(y0, x1) * (wy0 * wx1)[..., None]
             + tap(y1, x0) * (wy1 * wx0)[..., None]
             + tap(y1, x1) * (wy1 * wx1)[..., None])
        sampled.append(s)
    out = jnp.stack(sampled, axis=3)                         # (B, Nq, H, L, P, Dh)
    out = (out * attention_weights[..., None]).sum(axis=(3, 4))   # (B, Nq, H, Dh)
    return out.reshape(b, nq, n_heads * dh)


def ms_deform_attention_block(cp, hp, query_with_pos, residual, gamma, beta,
                              reference_points, value, spatial_shapes, key_padding_mask):
    b, nq, c = query_with_pos.shape
    nv = value.shape[1]
    n_heads, n_levels, n_points = hp["n_heads"], hp["n_levels"], hp["n_points"]
    dh = c // n_heads

    # value projection with the key-padding mask fused as a per-row scale
    v = pallas_linear(value, cp["value_proj_w"], cp["value_proj_b"],
                      row_scale=(~key_padding_mask).astype(jnp.float32))
    v = v.reshape(b, nv, n_heads, dh)

    # fused sampling-offset + attention-weight projection (same input query)
    mix = pallas_linear(query_with_pos, cp["off_aw_w"], cp["off_aw_b"])
    n_off = n_heads * n_levels * n_points * 2
    offs = mix[..., :n_off].reshape(b, nq, n_heads, n_levels, n_points, 2)
    aw = mix[..., n_off:].reshape(b, nq, n_heads, n_levels * n_points)
    aw = jax.nn.softmax(aw, axis=-1).reshape(b, nq, n_heads, n_levels, n_points)

    offset_normalizer = jnp.array([[ww, hh] for (hh, ww) in spatial_shapes],
                                  dtype=jnp.float32)         # (L, 2) = (W, H)
    loc = (reference_points[:, :, None, :, None, :]
           + offs / offset_normalizer[None, None, None, :, None, :])
    out = ms_deform_attn_core(v, spatial_shapes, loc, aw)
    # out-projection + residual + norm1 fused
    return pallas_linear_add_ln(out, cp["out_proj_w"], cp["out_proj_b"], residual, gamma, beta)


# ----------------------------------------------------------------------------- #
# SalienceTransformerEncoderLayer forward (eval mode, dropout = identity)
# ----------------------------------------------------------------------------- #
def encoder_layer_forward(lp, hp, query, query_pos, value, reference_points,
                          spatial_shapes, key_padding_mask, score_tgt, foreground_pre_layer):
    b, k, c = query.shape
    n_heads = hp["n_heads"]
    topk_sa = hp["topk_sa"]

    # salience-guided pre self-attention on top-k tokens
    mc_score = jnp.max(score_tgt, axis=-1) * foreground_pre_layer            # (B, K)
    _, sel_idx = jax.lax.top_k(mc_score, topk_sa)                            # (B, topk_sa)
    select_tgt = jnp.take_along_axis(query, sel_idx[..., None], axis=1)
    select_pos = jnp.take_along_axis(query_pos, sel_idx[..., None], axis=1)
    qk = select_tgt + select_pos
    select_tgt = multihead_attention_block(lp["pre_attn"], qk, select_tgt, select_tgt,
                                           lp["pre_norm_g"], lp["pre_norm_b"], n_heads)
    batch_ar = jnp.arange(b)[:, None]
    query = query.at[batch_ar, sel_idx].set(select_tgt)                      # scatter back

    # multi-scale deformable cross attention into the full value map (+ norm1 fused)
    query = ms_deform_attention_block(lp["ca"], hp, query + query_pos, query,
                                      lp["norm1_g"], lp["norm1_b"],
                                      reference_points, value, spatial_shapes, key_padding_mask)

    # FFN (linear1 + ReLU + linear2 + residual + norm2 fused in one kernel)
    query = pallas_ffn_ln(query, lp["linear1_w"], lp["linear1_b"],
                          lp["linear2_w"], lp["linear2_b"],
                          lp["norm2_g"], lp["norm2_b"])
    return query


# ----------------------------------------------------------------------------- #
# SalienceTransformerEncoder forward
# ----------------------------------------------------------------------------- #
def get_reference_points(spatial_shapes, valid_ratios):
    ref_list = []
    for lvl, (h, w) in enumerate(spatial_shapes):
        ref_y, ref_x = jnp.meshgrid(jnp.linspace(0.5, h - 0.5, h, dtype=jnp.float32),
                                    jnp.linspace(0.5, w - 0.5, w, dtype=jnp.float32),
                                    indexing="ij")
        ref_y = ref_y.reshape(-1)[None] / (valid_ratios[:, None, lvl, 1] * h)
        ref_x = ref_x.reshape(-1)[None] / (valid_ratios[:, None, lvl, 0] * w)
        ref_list.append(jnp.stack((ref_x, ref_y), -1))
    reference_points = jnp.concatenate(ref_list, 1)                          # (B, N, 2)
    reference_points = reference_points[:, :, None] * valid_ratios[:, None]  # (B, N, L, 2)
    return reference_points


def background_embedding_fn(bgp, multi_level_masks, embed_dim):
    # PositionEmbeddingLearned per level, flattened to (B, H*W, C), concatenated over levels.
    half = embed_dim // 2
    embs = []
    for mask in multi_level_masks:
        b, h, w = mask.shape
        x_emb = bgp["col_embed"][:w]                                         # (w, C/2)
        y_emb = bgp["row_embed"][:h]                                         # (h, C/2)
        pos = jnp.concatenate([
            jnp.broadcast_to(x_emb[None, :, :], (h, w, half)),
            jnp.broadcast_to(y_emb[:, None, :], (h, w, half)),
        ], axis=-1).reshape(1, h * w, embed_dim)
        embs.append(jnp.broadcast_to(pos, (b, h * w, embed_dim)))
    return jnp.concatenate(embs, axis=1)


def salience_transformer_encoder_forward(params, query, spatial_shapes, level_start_index,
                                         valid_ratios, query_pos, query_key_padding_mask,
                                         foreground_score, focus_token_nums, foreground_inds,
                                         multi_level_masks):
    del level_start_index  # levels are sliced by static cumulative offsets
    c = params["embed_dim"]
    reference_points = get_reference_points(spatial_shapes, valid_ratios)
    b, n, s, p2 = reference_points.shape
    ori_reference_points = reference_points
    ori_pos = query_pos
    value = output = query
    batch_ar = jnp.arange(b)[:, None]
    inds_for_query = None

    for layer_id in range(params["num_layers"]):
        inds = foreground_inds[layer_id]                                     # (B, K)
        k = inds.shape[1]
        inds_for_query = inds
        q = jnp.take_along_axis(output, inds[..., None], axis=1)             # gather tokens
        qpos = jnp.take_along_axis(ori_pos, inds[..., None], axis=1)
        fg_pre = jnp.take_along_axis(foreground_score, inds, axis=1)
        rp = jnp.take_along_axis(ori_reference_points.reshape(b, n, s * p2),
                                 inds[..., None], axis=1).reshape(b, k, s, p2)

        # self.enhance_mcsp is assigned externally in the original model; here: Linear(C, num_classes)
        score_tgt = pallas_linear(q, params["enhance_mcsp_w"], params["enhance_mcsp_b"])

        q = encoder_layer_forward(params["layers"][layer_id], params, q, qpos, value, rp,
                                  spatial_shapes, query_key_padding_mask, score_tgt, fg_pre)

        # scatter the first focus_token_nums[i] rows back into the dense token map
        # (invalid rows get an out-of-bounds index and are dropped -> no (B, N+1, C) copy)
        valid = jnp.arange(k)[None, :] < focus_token_nums[:, None]           # (B, K)
        safe_inds = jnp.where(valid, inds, n)                                # padded rows -> OOB
        output = output.at[batch_ar, safe_inds].set(q, mode="drop")

    if multi_level_masks is not None:
        bg = background_embedding_fn(params["bg"], multi_level_masks, c)
        bg = bg.at[batch_ar, inds_for_query].set(0.0)                        # scatter_(1, inds, 0)
        bg = bg * (~query_key_padding_mask)[..., None].astype(bg.dtype)
        output = output + bg
    return output


# ----------------------------------------------------------------------------- #
# Deterministic parameter construction (fused projection weights built here)
# ----------------------------------------------------------------------------- #
def init_params(key, *, embed_dim, num_layers, n_heads, n_levels, n_points, d_ffn,
                topk_sa, num_classes, max_num_embedding):
    keys = iter(jax.random.split(key, 256))

    def nk():
        return next(keys)

    def lin(din, dout, scale=0.05):
        w = scale * jax.random.normal(nk(), (din, dout), jnp.float32)
        b = 0.01 * jax.random.normal(nk(), (dout,), jnp.float32)
        return w, b

    def mha_params():
        wq, bq = lin(embed_dim, embed_dim)
        wk, bk = lin(embed_dim, embed_dim)
        wv, bv = lin(embed_dim, embed_dim)
        wo, bo = lin(embed_dim, embed_dim)
        return {"wqk": jnp.concatenate([wq, wk], axis=1),
                "bqk": jnp.concatenate([bq, bk], axis=0),
                "wv": wv, "bv": bv, "wo": wo, "bo": bo}

    layers = []
    for _ in range(num_layers):
        vpw, vpb = lin(embed_dim, embed_dim)
        sow, sob = lin(embed_dim, n_heads * n_levels * n_points * 2, scale=0.02)
        aww, awb = lin(embed_dim, n_heads * n_levels * n_points, scale=0.02)
        opw, opb = lin(embed_dim, embed_dim)
        l1w, l1b = lin(embed_dim, d_ffn)
        l2w, l2b = lin(d_ffn, embed_dim)
        layers.append({
            "pre_attn": mha_params(),
            "pre_norm_g": jnp.ones((embed_dim,), jnp.float32),
            "pre_norm_b": jnp.zeros((embed_dim,), jnp.float32),
            "ca": {"value_proj_w": vpw, "value_proj_b": vpb,
                   # fused sampling-offset | attention-weight projection
                   "off_aw_w": jnp.concatenate([sow, aww], axis=1),
                   "off_aw_b": jnp.concatenate([sob, awb], axis=0),
                   "out_proj_w": opw, "out_proj_b": opb},
            "norm1_g": jnp.ones((embed_dim,), jnp.float32),
            "norm1_b": jnp.zeros((embed_dim,), jnp.float32),
            "linear1_w": l1w, "linear1_b": l1b,
            "linear2_w": l2w, "linear2_b": l2b,
            "norm2_g": jnp.ones((embed_dim,), jnp.float32),
            "norm2_b": jnp.zeros((embed_dim,), jnp.float32),
        })
    ew, eb = lin(embed_dim, num_classes)
    bg = {"row_embed": 0.05 * jax.random.normal(nk(), (max_num_embedding, embed_dim // 2), jnp.float32),
          "col_embed": 0.05 * jax.random.normal(nk(), (max_num_embedding, embed_dim // 2), jnp.float32)}
    return {"embed_dim": embed_dim, "num_layers": num_layers, "n_heads": n_heads,
            "n_levels": n_levels, "n_points": n_points, "topk_sa": topk_sa,
            "layers": layers, "enhance_mcsp_w": ew, "enhance_mcsp_b": eb, "bg": bg}


# ----------------------------------------------------------------------------- #
# Example run
# ----------------------------------------------------------------------------- #
if __name__ == "__main__":
    B = 2
    EMBED_DIM = 32
    NUM_LAYERS = 2
    N_HEADS = 4
    N_LEVELS = 2
    N_POINTS = 2
    D_FFN = 64
    TOPK_SA = 8
    NUM_CLASSES = 8
    K_FOCUS = 16
    MAX_NUM_EMBEDDING = 200
    spatial_shapes = ((8, 8), (4, 4))
    N = sum(h * w for h, w in spatial_shapes)
    level_start_index = jnp.array([0, 64], dtype=jnp.int32)

    root = jax.random.PRNGKey(0)
    k_param, k_q, k_pos, k_fg, k_vr, k_inds = jax.random.split(root, 6)

    params = init_params(k_param, embed_dim=EMBED_DIM, num_layers=NUM_LAYERS, n_heads=N_HEADS,
                         n_levels=N_LEVELS, n_points=N_POINTS, d_ffn=D_FFN, topk_sa=TOPK_SA,
                         num_classes=NUM_CLASSES, max_num_embedding=MAX_NUM_EMBEDDING)

    query = jax.random.normal(k_q, (B, N, EMBED_DIM), jnp.float32)
    query_pos = jax.random.normal(k_pos, (B, N, EMBED_DIM), jnp.float32)
    foreground_score = jax.nn.sigmoid(jax.random.normal(k_fg, (B, N), jnp.float32))
    valid_ratios = 0.75 + 0.25 * jax.random.uniform(k_vr, (B, N_LEVELS, 2), dtype=jnp.float32)

    query_key_padding_mask = jnp.zeros((B, N), dtype=bool)
    query_key_padding_mask = query_key_padding_mask.at[1, N - 4:].set(True)

    focus_token_nums = jnp.array([12, K_FOCUS], dtype=jnp.int32)
    foreground_inds = []
    for layer in range(NUM_LAYERS):
        kk = jax.random.fold_in(k_inds, layer)
        rows = [jax.random.permutation(jax.random.fold_in(kk, i), N)[:K_FOCUS] for i in range(B)]
        foreground_inds.append(jnp.stack(rows).astype(jnp.int32))            # (B, K) unique indices

    multi_level_masks = [jnp.zeros((B, h, w), dtype=bool) for (h, w) in spatial_shapes]

    out = salience_transformer_encoder_forward(
        params, query, spatial_shapes, level_start_index, valid_ratios,
        query_pos, query_key_padding_mask, foreground_score, focus_token_nums,
        foreground_inds, multi_level_masks)
    out = jax.block_until_ready(out)

    assert out.shape == (B, N, EMBED_DIM), out.shape
    assert bool(jnp.all(jnp.isfinite(out)))
    print("KERNEL_OK")
</pallas_src>

<mosaic_0001>
module attributes {stable_mosaic.version = 11 : i64} {
  func.func @_linear_kernel(%arg0: i32, %arg1: memref<32x32xf32, #tpu.memory_space<vmem>>, %arg2: memref<32x8xf32, #tpu.memory_space<vmem>>, %arg3: memref<1x8xf32, #tpu.memory_space<vmem>>, %arg4: memref<32x8xf32, #tpu.memory_space<vmem>>) attributes {dimension_semantics = [#tpu.dimension_semantics<parallel>], iteration_bounds = array<i64: 1>, scalar_prefetch = 0 : i64, scratch_operands = 0 : i64, tpu.core_type = #tpu.core_type<tc>, window_params = [{transform_indices = @transform_0, window_bounds = array<i64: 32, 32>}, {pipeline_mode = #tpu.pipeline_mode<synchronous>, transform_indices = @transform_1, window_bounds = array<i64: 32, 8>}, {pipeline_mode = #tpu.pipeline_mode<synchronous>, transform_indices = @transform_2, window_bounds = array<i64: 1, 8>}, {transform_indices = @transform_3, window_bounds = array<i64: 32, 8>}]} {
    %c0 = arith.constant 0 : index
    %c0_0 = arith.constant 0 : index
    %0 = vector.load %arg1[%c0, %c0_0] : memref<32x32xf32, #tpu.memory_space<vmem>>, vector<32x32xf32>
    %1 = arith.truncf %0 : vector<32x32xf32> to vector<32x32xbf16>
    %c0_1 = arith.constant 0 : index
    %c0_2 = arith.constant 0 : index
    %2 = vector.load %arg2[%c0_1, %c0_2] : memref<32x8xf32, #tpu.memory_space<vmem>>, vector<32x8xf32>
    %3 = arith.truncf %2 : vector<32x8xf32> to vector<32x8xbf16>
    %cst = arith.constant dense<0.000000e+00> : vector<32x8xf32>
    %4 = tpu.matmul %1, %3, %cst {dimension_numbers = #tpu.dot_dimension_numbers<[1], [0], [0], [1], [0, 0, 1, 1], [], []>} : vector<32x32xbf16>, vector<32x8xbf16>, vector<32x8xf32> -> vector<32x8xf32>
    %c0_3 = arith.constant 0 : index
    %c0_4 = arith.constant 0 : index
    %5 = vector.load %arg3[%c0_3, %c0_4] : memref<1x8xf32, #tpu.memory_space<vmem>>, vector<1x8xf32>
    %6 = vector.broadcast %5 : vector<1x8xf32> to vector<32x8xf32>
    %7 = arith.addf %4, %6 : vector<32x8xf32>
    %c0_5 = arith.constant 0 : index
    %c0_6 = arith.constant 0 : index
    %8 = vector.load %arg4[%c0_5, %c0_6] : memref<32x8xf32, #tpu.memory_space<vmem>>, vector<32x8xf32>
    tpu.vector_store %arg4[%c0_5, %c0_6], %7 {strides = array<i32>} : memref<32x8xf32, #tpu.memory_space<vmem>>, vector<32x8xf32>,
    return
  }
  func.func @transform_0(%arg0: i32) -> (i32, i32) {
    %c0_i32 = arith.constant 0 : i32
    %c0_i32_0 = arith.constant 0 : i32
    return %arg0, %c0_i32 : i32, i32
  }
  func.func @transform_1(%arg0: i32) -> (i32, i32) {
    %c0_i32 = arith.constant 0 : i32
    %c0_i32_0 = arith.constant 0 : i32
    %c0_i32_1 = arith.constant 0 : i32
    return %c0_i32, %c0_i32_0 : i32, i32
  }
  func.func @transform_2(%arg0: i32) -> (i32, i32) {
    %c0_i32 = arith.constant 0 : i32
    %c0_i32_0 = arith.constant 0 : i32
    %c0_i32_1 = arith.constant 0 : i32
    return %c0_i32, %c0_i32_0 : i32, i32
  }
  func.func @transform_3(%arg0: i32) -> (i32, i32) {
    %c0_i32 = arith.constant 0 : i32
    %c0_i32_0 = arith.constant 0 : i32
    return %arg0, %c0_i32 : i32, i32
  }
}

</mosaic_0001>

<bundles_post_ra>
// kernel: tpu_custom_call.1
= control target key start
LH: loop header
LB: loop body
LE: loop exit
PB: predicated region body
PF: predicated region fallthrough
CT: control target
= control target key end

     0   :  { %vm34_vm0 = vcmask 261120   ;;  %vm90_vm1 = vcmask 64512   ;;  %s173_s1 = inlined_call_operand.vmem [shape: f32[32,8], index: 1, kind: input, shape index: {}]   ;;  %s174_s0 = inlined_call_operand.vmem [shape: f32[32,32], index: 0, kind: input, shape index: {}]   ;;  %s175_s2 = inlined_call_operand.vmem [shape: f32[1,8], index: 2, kind: input, shape index: {}]   ;;  %s176_s3 = inlined_call_operand.vmem [shape: f32[32,8], index: 3, kind: output, shape index: {}]  }
   0x1   :  { %v21_v0 = vld [vmem:[%s173_s1] sm:$0xff]  ;;  %v22_v1 = vld [vmem:[%s173_s1 + $0x8] sm:$0xff]  ;;  %v23_v2 = vld [vmem:[%s173_s1 + $0x10] sm:$0xff] }
   0x2   :  { %v25_v3 = vpack.c.bf16 %v22_v1, %v21_v0  ;;  %v24_v4 = vld [vmem:[%s173_s1 + $0x18] sm:$0xff]  ;;  %v15_v5 = vld [vmem:[%s174_s0] sm:$0xff]  ;;  %v16_v6 = vld [vmem:[%s174_s0 + $0x8] sm:$0xff] }
   0x3   :  { %v26_v7 = vpack.c.bf16 %v24_v4, %v23_v2  ;;  %v19_v8 = vpack.c.bf16 %v16_v6, %v15_v5  ;;  %v17_v9 = vld [vmem:[%s174_s0 + $0x10] sm:$0xff]  ;;  %v18_v10 = vld [vmem:[%s174_s0 + $0x18] sm:$0xff]  ;;  %v99_v12 = vld [vmem:[%s175_s2] ss:$0 sm:$0xff] }
   0x4   :  { %106 = vmatprep.subr.bf16.mxu0 %v25_v3  ;;  %v20_v11 = vpack.c.bf16 %v18_v10, %v17_v9 }
   0x5   :  { %107 = vmatpush3.bf16.msra.mxu0 %v25_v3  ;;  %110 = vmatprep.mubr.msk.bf16.mxu0 %vm34_vm0, %v19_v8 }
   0x6   :  { %108 = vmatprep.subr.bf16.mxu0 %v26_v7 }
   0x9   :  { %109 = vmatpush3.bf16.msra.mxu0 %v26_v7 }
   0xc   :  { %111 = vmatmul.mubr.msk.bf16.vlgmr.msra.gmra.mrb[0].mxu0 %vm34_vm0, %v20_v11 }
  0xdf   :  { %v112_v13 = vpop.f32.mrb[0].mxu0 }
  0xe0   :  { %v84_v14 = vadd.f32 %v112_v13, %v99_v12  ;;  %v75_v15 = vpop.f32.mrb[1].mxu0 }
  0xe1   :  { %v76_v16 = vadd.f32 %v99_v12, %v75_v15  ;;  %v113_v17 = vpop.f32.mrb[2].mxu0 }
  0xe2   :  { %93 = vst.msk [vmem:[%s176_s3 + $0x10] sm:$0xff] %vm90_vm1, %v84_v14  ;;  %v87_v18 = vadd.f32 %v113_v17, %v99_v12  ;;  %v78_v19 = vpop.f32.mrb[3].mxu0 }
  0xe3   :  { %91 = vst.msk [vmem:[%s176_s3] sm:$0xff] %vm90_vm1, %v76_v16  ;;  %v79_v20 = vadd.f32 %v99_v12, %v78_v19 }
  0xe4   :  { %94 = vst.msk [vmem:[%s176_s3 + $0x18] sm:$0xff] %vm90_vm1, %v87_v18 }
  0xe5   :  { %92 = vst.msk [vmem:[%s176_s3 + $0x8] sm:$0xff] %vm90_vm1, %v79_v20 }

</bundles_post_ra>
